<compile_context>
chip_gen: v5e
topology: v5e:2x2
jax: 0.10.0
libtpu: 0.0.40
codegen_flags: <defaults>
</compile_context>

<pallas_src>
import numpy as np
import jax
import jax.numpy as jnp
from jax.experimental import pallas as pl
from jax.experimental.pallas import tpu as pltpu


# ----------------------------- kernels --------------------------------------


def _abs_tim_emb_kernel(x_ref, coef_ref, phase_ref, o_ref):
    # x_ref: (TN, 1), coef/phase: (1, D), o_ref: (TN, D)
    # One FMA-shaped VPU op + one EUP sin per element; store-bound.
    o_ref[...] = jnp.sin(x_ref[...] * coef_ref[...] + phase_ref[...])


def _abs_tim_emb_packed_kernel(x_ref, e_ref, coef_ref, phase_ref, o_ref):
    # x_ref:    (TNp, R)   R = 128 // d_model packed time values per lane-row
    # e_ref:    (R, 128)   block-diagonal ones: expands each value to D lanes
    # coef/phase: (1, 128) coef/phase tiled R times along lanes
    # o_ref:    (TNp, 128) lane-dense output slab
    xe = jnp.dot(x_ref[...], e_ref[...], preferred_element_type=jnp.float32)
    o_ref[...] = jnp.sin(xe * coef_ref[...] + phase_ref[...])


# ----------------------------- wrapper ---------------------------------------


def _round_up(x, m):
    return ((x + m - 1) // m) * m


def _choose_rows(n_rows, row_bytes, target_bytes=2 * 1024 * 1024, max_rows=4096):
    """Pick a row-tile size: ~2 MiB per output tile, multiple of 8 sublanes.

    Double-buffered that is ~4 MiB of VMEM, comfortably inside the 16 MiB
    (v5e) / 32 MiB (v6e, v7x) default scoped VMEM limits.
    """
    t = max(8, min(max_rows, target_bytes // max(row_bytes, 1)))
    t = (t // 8) * 8
    if t >= n_rows:
        return int(n_rows)  # single full-extent block (always a legal shape)
    return int(t)


def abs_tim_emb(x, d_model, *, fourier=False):
    """x: (B, S) float32 times -> (B, S, d_model) float32 embedding."""
    B, S = x.shape
    N = B * S
    dtype = jnp.float32

    # Parameter-free coefficients (host-side glue).
    a = np.floor(np.arange(d_model, dtype=np.float64) / 2.0) * 2.0 / float(d_model)
    if fourier:
        coef_np = 0.0001 ** a
    else:
        coef_np = (2.0 * np.pi / 1440.0) * a
    # cos(b) == sin(b + pi/2): bake the even/odd select into a phase vector.
    phase_np = np.where(np.arange(d_model) % 2 == 0, 0.0, np.pi / 2.0)

    x_flat = x.reshape(N).astype(dtype)

    cost = pl.CostEstimate(
        flops=2 * N * d_model,
        transcendentals=N * d_model,
        bytes_accessed=4 * (N + 3 * d_model + N * d_model),
    )

    use_packed = (d_model < 128) and (128 % d_model == 0)

    if use_packed:
        # ---- lane-dense packed path (small d_model) -------------------------
        R = 128 // d_model                      # rows packed per 128-lane row
        N_pad = _round_up(N, 8 * R)             # keep sublane count a mult. of 8
        if N_pad != N:
            x_flat = jnp.pad(x_flat, (0, N_pad - N))
        n_pack = N_pad // R
        x_pack = x_flat.reshape(n_pack, R)

        e_np = np.kron(np.eye(R), np.ones((1, d_model)))            # (R, 128)
        e_mat = jnp.asarray(e_np, dtype)
        coef_t = jnp.asarray(np.tile(coef_np, R).reshape(1, 128), dtype)
        phase_t = jnp.asarray(np.tile(phase_np, R).reshape(1, 128), dtype)

        tn = _choose_rows(n_pack, 128 * 4)
        grid = (pl.cdiv(n_pack, tn),)

        out_pack = pl.pallas_call(
            _abs_tim_emb_packed_kernel,
            out_shape=jax.ShapeDtypeStruct((n_pack, 128), dtype),
            grid_spec=pltpu.PrefetchScalarGridSpec(
                num_scalar_prefetch=0,
                grid=grid,
                in_specs=[
                    pl.BlockSpec((tn, R), lambda i: (i, 0)),
                    pl.BlockSpec((R, 128), lambda i: (0, 0)),
                    pl.BlockSpec((1, 128), lambda i: (0, 0)),
                    pl.BlockSpec((1, 128), lambda i: (0, 0)),
                ],
                out_specs=pl.BlockSpec((tn, 128), lambda i: (i, 0)),
            ),
            compiler_params=pltpu.CompilerParams(
                dimension_semantics=("parallel",)),
            cost_estimate=cost,
        )(x_pack, e_mat, coef_t, phase_t)

        out = out_pack.reshape(N_pad, d_model)
        if N_pad != N:
            out = out[:N]
    else:
        # ---- simple path (d_model >= 128, or d_model not dividing 128) -----
        # Note: if d_model is not a multiple of 128 this falls back to a
        # lane-padded output block (full-extent last dim), which is correct
        # but stores with lane masks.
        coef = jnp.asarray(coef_np.reshape(1, d_model), dtype)
        phase = jnp.asarray(phase_np.reshape(1, d_model), dtype)
        x_col = x_flat.reshape(N, 1)

        tn = _choose_rows(N, d_model * 4)
        grid = (pl.cdiv(N, tn),)

        out = pl.pallas_call(
            _abs_tim_emb_kernel,
            out_shape=jax.ShapeDtypeStruct((N, d_model), dtype),
            grid_spec=pltpu.PrefetchScalarGridSpec(
                num_scalar_prefetch=0,
                grid=grid,
                in_specs=[
                    pl.BlockSpec((tn, 1), lambda i: (i, 0)),
                    pl.BlockSpec((1, d_model), lambda i: (0, 0)),
                    pl.BlockSpec((1, d_model), lambda i: (0, 0)),
                ],
                out_specs=pl.BlockSpec((tn, d_model), lambda i: (i, 0)),
            ),
            compiler_params=pltpu.CompilerParams(
                dimension_semantics=("parallel",)),
            cost_estimate=cost,
        )(x_col, coef, phase)

    return out.reshape(B, S, d_model)


# ----------------------------- reference / test ------------------------------


def _reference(x, d_model, fourier=False):
    a = np.floor(np.arange(0.0, d_model) / 2.0) * 2.0 / d_model
    coef = 0.0001 ** a if fourier else 2.0 * np.pi / 1440.0 * a
    b = np.asarray(x, dtype=np.float64)[..., None] * coef[None, :]
    c = np.zeros_like(b)
    c[..., 0::2] = np.sin(b[..., 0::2])
    c[..., 1::2] = np.cos(b[..., 1::2])
    return c.astype(np.float32)


if __name__ == "__main__":
    key = jax.random.PRNGKey(0)
    k1, k2, k3 = jax.random.split(key, 3)

    # Test 1: small d_model -> lane-dense packed path (minutes-of-day inputs).
    B, S, D = 2, 8, 32
    x1 = jax.random.uniform(k1, (B, S), dtype=jnp.float32, minval=0.0, maxval=1440.0)
    out1 = jax.block_until_ready(abs_tim_emb(x1, D, fourier=False))
    np.testing.assert_allclose(
        np.asarray(out1), _reference(np.asarray(x1), D, False), rtol=1e-5, atol=1e-5)

    # Test 2: d_model multiple of 128 -> simple tiled path.
    D2 = 256
    x2 = jax.random.uniform(k2, (B, S), dtype=jnp.float32, minval=0.0, maxval=1440.0)
    out2 = jax.block_until_ready(abs_tim_emb(x2, D2, fourier=False))
    np.testing.assert_allclose(
        np.asarray(out2), _reference(np.asarray(x2), D2, False), rtol=1e-5, atol=1e-5)

    # Test 3: fourier variant (packed path), moderate-magnitude arguments.
    D3 = 64
    x3 = jax.random.uniform(k3, (B, S), dtype=jnp.float32, minval=0.0, maxval=100.0)
    out3 = jax.block_until_ready(abs_tim_emb(x3, D3, fourier=True))
    np.testing.assert_allclose(
        np.asarray(out3), _reference(np.asarray(x3), D3, True), rtol=1e-4, atol=1e-4)

    print("KERNEL_OK")
</pallas_src>

<mosaic_0001>
module attributes {stable_mosaic.version = 11 : i64} {
  func.func @_abs_tim_emb_packed_kernel(%arg0: i32, %arg1: memref<8x4xf32, #tpu.memory_space<vmem>>, %arg2: memref<4x128xf32, #tpu.memory_space<vmem>>, %arg3: memref<1x128xf32, #tpu.memory_space<vmem>>, %arg4: memref<1x128xf32, #tpu.memory_space<vmem>>, %arg5: memref<8x128xf32, #tpu.memory_space<vmem>>) attributes {dimension_semantics = [#tpu.dimension_semantics<parallel>], iteration_bounds = array<i64: 1>, scalar_prefetch = 0 : i64, scratch_operands = 0 : i64, tpu.core_type = #tpu.core_type<tc>, window_params = [{transform_indices = @transform_0, window_bounds = array<i64: 8, 4>}, {pipeline_mode = #tpu.pipeline_mode<synchronous>, transform_indices = @transform_1, window_bounds = array<i64: 4, 128>}, {pipeline_mode = #tpu.pipeline_mode<synchronous>, transform_indices = @transform_2, window_bounds = array<i64: 1, 128>}, {pipeline_mode = #tpu.pipeline_mode<synchronous>, transform_indices = @transform_3, window_bounds = array<i64: 1, 128>}, {transform_indices = @transform_4, window_bounds = array<i64: 8, 128>}]} {
    %c0 = arith.constant 0 : index
    %c0_0 = arith.constant 0 : index
    %0 = vector.load %arg1[%c0, %c0_0] : memref<8x4xf32, #tpu.memory_space<vmem>>, vector<8x4xf32>
    %c0_1 = arith.constant 0 : index
    %c0_2 = arith.constant 0 : index
    %1 = vector.load %arg2[%c0_1, %c0_2] : memref<4x128xf32, #tpu.memory_space<vmem>>, vector<4x128xf32>
    %cst = arith.constant dense<0.000000e+00> : vector<8x128xf32>
    %2 = tpu.matmul %0, %1, %cst {dimension_numbers = #tpu.dot_dimension_numbers<[1], [0], [0], [1], [0, 0, 1, 1], [], []>} : vector<8x4xf32>, vector<4x128xf32>, vector<8x128xf32> -> vector<8x128xf32>
    %c0_3 = arith.constant 0 : index
    %c0_4 = arith.constant 0 : index
    %3 = vector.load %arg3[%c0_3, %c0_4] : memref<1x128xf32, #tpu.memory_space<vmem>>, vector<1x128xf32>
    %4 = vector.broadcast %3 : vector<1x128xf32> to vector<8x128xf32>
    %5 = arith.mulf %2, %4 : vector<8x128xf32>
    %c0_5 = arith.constant 0 : index
    %c0_6 = arith.constant 0 : index
    %6 = vector.load %arg4[%c0_5, %c0_6] : memref<1x128xf32, #tpu.memory_space<vmem>>, vector<1x128xf32>
    %7 = vector.broadcast %6 : vector<1x128xf32> to vector<8x128xf32>
    %8 = arith.addf %5, %7 : vector<8x128xf32>
    %9 = math.sin %8 : vector<8x128xf32>
    %c0_7 = arith.constant 0 : index
    %c0_8 = arith.constant 0 : index
    %10 = vector.load %arg5[%c0_7, %c0_8] : memref<8x128xf32, #tpu.memory_space<vmem>>, vector<8x128xf32>
    tpu.vector_store %arg5[%c0_7, %c0_8], %9 {strides = array<i32>} : memref<8x128xf32, #tpu.memory_space<vmem>>, vector<8x128xf32>,
    return
  }
  func.func @transform_0(%arg0: i32) -> (i32, i32) {
    %c0_i32 = arith.constant 0 : i32
    %c0_i32_0 = arith.constant 0 : i32
    return %arg0, %c0_i32 : i32, i32
  }
  func.func @transform_1(%arg0: i32) -> (i32, i32) {
    %c0_i32 = arith.constant 0 : i32
    %c0_i32_0 = arith.constant 0 : i32
    %c0_i32_1 = arith.constant 0 : i32
    return %c0_i32, %c0_i32_0 : i32, i32
  }
  func.func @transform_2(%arg0: i32) -> (i32, i32) {
    %c0_i32 = arith.constant 0 : i32
    %c0_i32_0 = arith.constant 0 : i32
    %c0_i32_1 = arith.constant 0 : i32
    return %c0_i32, %c0_i32_0 : i32, i32
  }
  func.func @transform_3(%arg0: i32) -> (i32, i32) {
    %c0_i32 = arith.constant 0 : i32
    %c0_i32_0 = arith.constant 0 : i32
    %c0_i32_1 = arith.constant 0 : i32
    return %c0_i32, %c0_i32_0 : i32, i32
  }
  func.func @transform_4(%arg0: i32) -> (i32, i32) {
    %c0_i32 = arith.constant 0 : i32
    %c0_i32_0 = arith.constant 0 : i32
    return %arg0, %c0_i32 : i32, i32
  }
}

</mosaic_0001>

<bundles_post_ra>
// kernel: tpu_custom_call.1
= control target key start
LH: loop header
LB: loop body
LE: loop exit
PB: predicated region body
PF: predicated region fallthrough
CT: control target
= control target key end

     0   :  { %vm24_vm0 = vcmask 1043456   ;;  %vm20_vm1 = vcmask 31744   ;;  %s373_s0 = inlined_call_operand.vmem [shape: f32[8,4], index: 0, kind: input, shape index: {}]   ;;  %s374_s1 = inlined_call_operand.vmem [shape: f32[4,128], index: 1, kind: input, shape index: {}]   ;;  %s375_s2 = inlined_call_operand.vmem [shape: f32[1,128], index: 2, kind: input, shape index: {}]   ;;  %s376_s3 = inlined_call_operand.vmem [shape: f32[1,128], index: 3, kind: input, shape index: {}]   ;;  %s377_s4 = inlined_call_operand.hbm [shape: f32[8,128], index: 4, kind: output, shape index: {}]  }
   0x1   :  { %v19_v0 = vld [vmem:[%s374_s1] sm:$0xf] }
   0x2   :  { %v18_v1 = vld [vmem:[%s373_s0] sm:$0xff]  ;;  %230 = vmatpush.msk.msra.mxu0 %vm24_vm0, %v19_v0 }
   0x3   :  { %9 = vsyncpa [#allocation3], 0  ;;  %231 = vmatmul.msk.f32.vlgmr.msra.gmra.mxu0 %vm20_vm1, %v18_v1  ;;  %v243_v2 = vld [vmem:[%s375_s2] ss:$0 sm:$0xff]  ;;  %v271_v18 = vmov 683565275  }
   0x4   :  { %v244_v3 = vld [vmem:[%s376_s3] ss:$0 sm:$0xff]  ;;  %v272_v20 = vmov 2475754826   ;;  %v273_v22 = vmov 2131351028  }
   0x5   :  { %v274_v24 = vmov 2102212464   ;;  %v275_v29 = vmov 920167782   ;;  %v276_v32 = vmov 1326507024  }
   0x6   :  { %s278_s0 = smov [#allocation2]   ;;  %s221_s23 = sshll.u32 %s377_s4, 4  ;;  %s222_s23 = int_to_ptr.hbm [resolvable:$true] %s221_s23 }
   0x7   :  { %s219_s1 = sshll.u32 %s278_s0, 4  ;;  %s220_s1 = int_to_ptr.vmem [resolvable:$true] %s219_s1 }
  0x80   :  { %v45_v4 = vpop.f32.mrf.mxu0 }
  0x81   :  { %v52_v5 = vmul.f32 %v243_v2, %v45_v4  ;;  %v277_v4 = vmov 0  }
  0x83   :  { %v316_v6 = vadd.f32 %v244_v3, %v52_v5 }
  0x85   :  { %v61_v7 = vand.u32 2139095040, %v316_v6  ;;  %v58_v9 = vand.u32 2147483647, %v316_v6  ;;  %vm60_vm14 = vcmp.lt.s32.totalorder %v316_v6, 0 }
  0x87   :  { %v62_v8 = vshrl.u32 %v61_v7, 23  ;;  %v65_v12 = vand.u32 8388607, %v58_v9  ;;  %vm59_vm15 = vcmp.le.f32.partialorder %v58_v9, 0.7853982 }
  0x89   :  { %v232_v10 = vadd.s32 4294967169, %v62_v8  ;;  %v66_v15 = vor.u32 8388608, %v65_v12 }
  0x8b   :  { %v68_v11 = vadd.s32 1, %v232_v10  ;;  %v331_v34 = vshll.u32 %v66_v15, 8 }
  0x8d   :  { %vm69_vm2 = vcmp.gt.s32.totalorder %v68_v11, 0  ;;  %v107_v46 = vand.u32 65535, %v331_v34  ;;  %v108_v48 = vshrl.u32 %v331_v34, 16 }
  0x8e   :  { %v70_v13 = vsel %vm69_vm2, %v68_v11, 0 }
  0x8f   :  { %v72_v14 = vand.u32 31, %v70_v13  ;;  %v322_v16 = vshrl.u32 %v70_v13, 5 }
  0x91   :  { %v324_v17 = vsub.s32 32, %v72_v14  ;;  %v75_v19 = vshll.u32 %v271_v18, %v72_v14  ;;  %v78_v21 = vshll.u32 %v272_v20, %v72_v14  ;;  %v81_v23 = vshll.u32 %v273_v22, %v72_v14 }
  0x92   :  { %v84_v25 = vshll.u32 %v274_v24, %v72_v14  ;;  %v87_v31 = vshll.u32 %v275_v29, %v72_v14  ;;  %vm90_vm3 = vcmp.lt.s32.totalorder %v322_v16, 1  ;;  %vm93_vm4 = vcmp.lt.s32.totalorder %v322_v16, 4 }
  0x93   :  { %v76_v26 = vshrl.u32 %v272_v20, %v324_v17  ;;  %v79_v27 = vshrl.u32 %v273_v22, %v324_v17  ;;  %v82_v28 = vshrl.u32 %v274_v24, %v324_v17  ;;  %v85_v30 = vshrl.u32 %v275_v29, %v324_v17 }
  0x94   :  { %v88_v33 = vshrl.u32 %v276_v32, %v324_v17  ;;  %vm92_vm5 = vcmp.lt.s32.totalorder %v322_v16, 3  ;;  %vm91_vm6 = vcmp.lt.s32.totalorder %v322_v16, 2  ;;  %v74_v11 = vshrl.u32 %v271_v18, %v324_v17 }
  0x95   :  { %v77_v35 = vor.u32 %v76_v26, %v75_v19  ;;  %v80_v36 = vor.u32 %v79_v27, %v78_v21  ;;  %v83_v37 = vor.u32 %v82_v28, %v81_v23  ;;  %v86_v38 = vor.u32 %v85_v30, %v84_v25 }
  0x96   :  { %v89_v39 = vor.u32 %v88_v33, %v87_v31 }
  0x97   :  { %v98_v40 = vsel %vm90_vm3, %v77_v35, %v80_v36  ;;  %v99_v41 = vsel %vm93_vm4, %v86_v38, 920167782  ;;  %v102_v42 = vsel %vm90_vm3, %v80_v36, %v83_v37  ;;  %v95_v7 = vsel %vm93_vm4, %v83_v37, 2102212464 }
  0x98   :  { %v100_v43 = vsel %vm92_vm5, %v83_v37, %v99_v41  ;;  %v103_v44 = vsel %vm93_vm4, %v89_v39, 1326507024  ;;  %v94_v20 = vsel %vm90_vm3, %v74_v11, %v77_v35  ;;  %v96_v21 = vsel %vm92_vm5, %v80_v36, %v95_v7 }
  0x99   :  { %v104_v45 = vsel %vm92_vm5, %v86_v38, %v103_v44  ;;  %v101_v47 = vsel %vm91_vm6, %v98_v40, %v100_v43  ;;  %v97_v17 = vsel %vm91_vm6, %v94_v20, %v96_v21  ;;  %vm201_vm3 = vweird.f32 %v316_v6 }
  0x9a   :  { %v105_v49 = vsel %vm91_vm6, %v102_v42, %v104_v45  ;;  %v131_v50 = vand.u32 65535, %v101_v47  ;;  %v132_v51 = vshrl.u32 %v101_v47, 16  ;;  %v151_v31 = vmul.u32 %v331_v34, %v97_v17 }
  0x9b   :  { %v109_v52 = vand.u32 65535, %v105_v49  ;;  %v110_v53 = vshrl.u32 %v105_v49, 16 }
  0x9c   :  { %v134_v54 = vmul.u32 %v132_v51, %v107_v46  ;;  %v135_v55 = vmul.u32 %v131_v50, %v108_v48  ;;  %v133_v58 = vmul.u32 %v131_v50, %v107_v46  ;;  %v136_v62 = vmul.u32 %v132_v51, %v108_v48 }
  0x9d   :  { %v112_v56 = vmul.u32 %v110_v53, %v107_v46  ;;  %v113_v57 = vmul.u32 %v109_v52, %v108_v48  ;;  %v111_v60 = vmul.u32 %v109_v52, %v107_v46  ;;  %v114_v63 = vmul.u32 %v110_v53, %v108_v48 }
  0x9e   :  { %v137_v59 = vshll.u32 %v134_v54, 16  ;;  %v139_v0 = vshll.u32 %v135_v55, 16  ;;  %v138_v15 = vshrl.u32 %v134_v54, 16  ;;  %v140_v24 = vshrl.u32 %v135_v55, 16 }
  0x9f   :  { %v115_v61 = vshll.u32 %v112_v56, 16  ;;  %v117_v2 = vshll.u32 %v113_v57, 16  ;;  %v116_v22 = vshrl.u32 %v112_v56, 16  ;;  %v118_v26 = vshrl.u32 %v113_v57, 16 }
  0xa0   :  { %vm141_vm7 = vc.u32 %v133_v58, %v137_v59  ;;  %v143_v1 = vadd.s32 %v137_v59, %v133_v58 }
  0xa1   :  { %vm119_vm8 = vc.u32 %v111_v60, %v115_v61  ;;  %v121_v3 = vadd.s32 %v115_v61, %v111_v60  ;;  %v142_v5 = vsel %vm141_vm7, 1, %v277_v4 }
  0xa2   :  { %v120_v8 = vsel %vm119_vm8, 1, %v277_v4  ;;  %v144_v10 = vadd.s32 %v142_v5, %v136_v62  ;;  %vm145_vm9 = vc.u32 %v143_v1, %v139_v0  ;;  %v147_v29 = vadd.s32 %v143_v1, %v139_v0 }
  0xa3   :  { %v122_v12 = vadd.s32 %v120_v8, %v114_v63  ;;  %vm123_vm10 = vc.u32 %v121_v3, %v117_v2  ;;  %v146_v13 = vsel %vm145_vm9, 1, %v277_v4 }
  0xa4   :  { %v124_v14 = vsel %vm123_vm10, 1, %v277_v4  ;;  %v148_v19 = vadd.s32 %v146_v13, %v144_v10 }
  0xa5   :  { %v126_v23 = vadd.s32 %v124_v14, %v122_v12 }
  0xa6   :  { %v149_v25 = vadd.s32 %v148_v19, %v138_v15 }
  0xa7   :  { %v127_v27 = vadd.s32 %v126_v23, %v116_v22 }
  0xa8   :  { %v150_v18 = vadd.s32 %v149_v25, %v140_v24 }
  0xa9   :  { %v128_v28 = vadd.s32 %v127_v27, %v118_v26 }
  0xaa   :  { %v154_v30 = vadd.s32 1, %v150_v18 }
  0xab   :  { %vm153_vm11 = vc.u32 %v128_v28, %v147_v29  ;;  %v152_v43 = vadd.s32 %v147_v29, %v128_v28 }
  0xac   :  { %v155_v32 = vsel %vm153_vm11, %v154_v30, %v150_v18 }
  0xad   :  { %v156_v33 = vadd.s32 %v155_v32, %v151_v31 }
  0xaf   :  { %v157_v35 = vadd.s32 536870912, %v156_v33 }
  0xb1   :  { %v158_v36 = vshrl.u32 %v157_v35, 30 }
  0xb3   :  { %v159_v37 = vshll.u32 %v158_v36, 30  ;;  %v182_v56 = vsub.s32 4, %v158_v36 }
  0xb5   :  { %v160_v38 = vsub.s32 %v156_v33, %v159_v37  ;;  %v183_v61 = vsel %vm60_vm14, %v182_v56, %v158_v36 }
  0xb6   :  { %v185_v0 = vsel %vm59_vm15, 0, %v183_v61 }
  0xb7   :  { %vm161_vm12 = vcmp.lt.s32.totalorder %v160_v38, 0  ;;  %v162_v39 = vsub.s32 0, %v160_v38  ;;  %v202_v5 = vadd.s32 3, %v185_v0 }
  0xb9   :  { %v163_v40 = vsel %vm161_vm12, %v162_v39, %v160_v38  ;;  %v203_v11 = vand.u32 3, %v202_v5 }
  0xba   :  { %v164_v41 = vclz %v163_v40 }
  0xbb   :  { %vm205_vm0 = vcmp.eq.s32.totalorder %v203_v11, 0  ;;  %vm208_vm1 = vcmp.eq.s32.totalorder %v203_v11, 2  ;;  %vm204_vm2 = vcmp.lt.s32.totalorder %v203_v11, 2 }
  0xbc   :  { %v233_v42 = vadd.s32 4294967294, %v164_v41 }
  0xbe   :  { %vm234_vm13 = vcmp.lt.s32.totalorder %v233_v42, 0 }
  0xbf   :  { %v167_v16 = vsel %vm234_vm13, 0, %v233_v42 }
  0xc0   :  { %v168_v44 = vsub.s32 32, %v167_v16  ;;  %v172_v45 = vsub.s32 4294967266, %v167_v16  ;;  %v169_v46 = vshll.u32 %v160_v38, %v167_v16 }
  0xc2   :  { %v170_v47 = vshrl.u32 %v152_v43, %v168_v44  ;;  %v173_v34 = vadd.s32 127, %v172_v45 }
  0xc4   :  { %v171_v48 = vor.u32 %v170_v47, %v169_v46  ;;  %v174_v49 = vshll.u32 %v173_v34, 23 }
  0xc6   :  { %v175_v50 = vor.u32 4788187, %v174_v49  ;;  %v178_v52 = vcvt.s32.f32 %v171_v48 }
  0xc8   :  { %v176_v51 = vand.u32 2147483647, %v175_v50 }
  0xca   :  { %v179_v53 = vmul.f32 %v178_v52, %v176_v51 }
  0xcc   :  { %v180_v54 = vxor.u32 2147483648, %v179_v53 }
  0xce   :  { %v181_v55 = vsel %vm60_vm14, %v180_v54, %v179_v53 }
  0xcf   :  { %v184_v57 = vsel %vm59_vm15, %v316_v6, %v181_v55 }
  0xd0   :  { %v186_v58 = vmul.f32 %v184_v57, %v184_v57 }
  0xd2   :  { %v187_v59 = vmul.f32 -0.001358992, %v186_v58  ;;  %v194_v60 = vmul.f32 -0.00019511016, %v186_v58 }
  0xd4   :  { %v188_v62 = vadd.f32 0.041655596, %v187_v59  ;;  %v195_v63 = vadd.f32 0.008332121, %v194_v60 }
  0xd6   :  { %v189_v1 = vmul.f32 %v188_v62, %v186_v58  ;;  %v196_v2 = vmul.f32 %v195_v63, %v186_v58 }
  0xd8   :  { %v190_v3 = vadd.f32 -0.4999988, %v189_v1  ;;  %v197_v4 = vadd.f32 -0.16666654, %v196_v2 }
  0xda   :  { %v191_v7 = vmul.f32 %v190_v3, %v186_v58  ;;  %v198_v8 = vmul.f32 %v197_v4, %v186_v58 }
  0xdc   :  { %v192_v10 = vadd.f32 1.0, %v191_v7  ;;  %v199_v9 = vadd.f32 1.0, %v198_v8 }
  0xde   :  { %v200_v12 = vmul.f32 %v199_v9, %v184_v57  ;;  %v209_v13 = vxor.u32 2147483648, %v192_v10 }
  0xe0   :  { %v206_v14 = vxor.u32 2147483648, %v200_v12  ;;  %v210_v19 = vsel %vm208_vm1, %v209_v13, %v200_v12 }
  0xe2   :  { %v207_v15 = vsel %vm205_vm0, %v192_v10, %v206_v14 }
  0xe3   :  { %v211_v20 = vsel %vm204_vm2, %v207_v15, %v210_v19 }
  0xe4   :  { %v212_v21 = vsel %vm201_vm3, nan, %v211_v20 }
  0xe5   :  { %213 = vst [vmem:[#allocation2] sm:$0xff] %v212_v21 }
  0xe6   :  { %224 = dma.vmem_to_hbm [thread:$0]  %s220_s1, 128, %s222_s23, [#allocation3]  }
  0xe7   :  { %269 = dma.done.wait [#allocation3], 128  }
  0xe8   :  { %270 = vsyncadd [#allocation3], 4294967168 }
  0xe9   :  { %229 = vsyncpa [#allocation3], 1 }

</bundles_post_ra>
